<compile_context>
chip_gen: v7x
topology: tpu7x:2x2x1
jax: 0.10.0
libtpu: 0.0.40
codegen_flags: <defaults>
</compile_context>

<pallas_src>
import functools

import jax
import jax.numpy as jnp
from jax import lax
from jax.experimental import pallas as pl
from jax.experimental.pallas import tpu as pltpu

LN_EPS = 1e-5  # nn.LayerNorm default


def _round_up(n, m):
    return (n + m - 1) // m * m


def _ffn_kernel(x_ref, w1_ref, b1_ref, w2_ref, b2_ref, gamma_ref, beta_ref,
                o_ref, *, d_real):
    x = x_ref[...]                                    # (TM, D_pad) f32

    # fc1 + ReLU : bf16 MXU inputs, f32 accumulate
    h = jnp.dot(x.astype(jnp.bfloat16), w1_ref[...],
                preferred_element_type=jnp.float32) + b1_ref[...]
    h = jnp.maximum(h, 0.0)

    # fc2 : bf16 MXU inputs, f32 accumulate
    y = jnp.dot(h.astype(jnp.bfloat16), w2_ref[...],
                preferred_element_type=jnp.float32) + b2_ref[...]

    # dropout with p=0.0 is the identity (module default) -> skipped
    r = y + x                                         # residual, f32

    # LayerNorm over the real dim_model (biased variance, like PyTorch).
    # Padded lanes of r are exactly zero by construction (zero-padded x, w2
    # output columns, b2), so the sum is already correct; only the centered
    # value needs masking.
    d_pad = r.shape[-1]
    inv_d = 1.0 / float(d_real)
    mean = jnp.sum(r, axis=-1, keepdims=True) * inv_d
    cent = r - mean
    if d_pad != d_real:
        lane = lax.broadcasted_iota(jnp.int32, r.shape, dimension=1)
        cent = jnp.where(lane < d_real, cent, 0.0)
    var = jnp.sum(cent * cent, axis=-1, keepdims=True) * inv_d
    normed = cent * lax.rsqrt(var + LN_EPS)
    o_ref[...] = normed * gamma_ref[...] + beta_ref[...]


def _pick_tm(m, d_pad, h_pad, budget_bytes=32 * 1024 * 1024):
    """Largest row tile (multiple of 8, <=512) that keeps per-step VMEM modest."""
    # per-row: x (2 bufs) + out (2 bufs) in f32 + h intermediate in f32
    per_row = (2 + 2) * d_pad * 4 + h_pad * 4
    # resident weights (bf16) + biases / LN params (f32)
    resident = 2 * d_pad * h_pad * 2 + (2 * h_pad + 6 * d_pad) * 4
    avail = max(budget_bytes - resident, 8 * per_row)
    tm = min(512, avail // per_row)
    tm = max(8, (tm // 8) * 8)
    return min(tm, _round_up(m, 8))


def position_wise_feed_forward(x, params):
    """x: (B, S, D) float32.  params: dict of w1,b1,w2,b2,gamma,beta (f32)."""
    B, S, D = x.shape
    H = params["w1"].shape[1]
    M = B * S

    D_pad = _round_up(D, 128)
    H_pad = _round_up(H, 128)
    TM = _pick_tm(M, D_pad, H_pad)
    M_pad = _round_up(M, TM)

    # Pad activations / params so lanes are dense (multiples of 128). Row
    # padding is harmless: LayerNorm is row-wise and padded rows are sliced off.
    x2d = jnp.pad(x.reshape(M, D), ((0, M_pad - M), (0, D_pad - D)))
    w1 = jnp.pad(params["w1"], ((0, D_pad - D), (0, H_pad - H))).astype(jnp.bfloat16)
    b1 = jnp.pad(params["b1"], ((0, 0), (0, H_pad - H)))
    w2 = jnp.pad(params["w2"], ((0, H_pad - H), (0, D_pad - D))).astype(jnp.bfloat16)
    b2 = jnp.pad(params["b2"], ((0, 0), (0, D_pad - D)))
    gamma = jnp.pad(params["gamma"], ((0, 0), (0, D_pad - D)))
    beta = jnp.pad(params["beta"], ((0, 0), (0, D_pad - D)))

    grid = (M_pad // TM,)
    row_spec = pl.BlockSpec((TM, D_pad), lambda i: (i, 0))
    # Constant block index => weights/biases stay VMEM-resident across the grid.
    w1_spec = pl.BlockSpec((D_pad, H_pad), lambda i: (0, 0))
    b1_spec = pl.BlockSpec((1, H_pad), lambda i: (0, 0))
    w2_spec = pl.BlockSpec((H_pad, D_pad), lambda i: (0, 0))
    vecD_spec = pl.BlockSpec((1, D_pad), lambda i: (0, 0))

    cost = pl.CostEstimate(
        flops=4 * M_pad * D_pad * H_pad,                       # two matmuls
        transcendentals=M_pad,                                  # rsqrt per row
        bytes_accessed=(2 * M_pad * D_pad * 4                   # x in + out
                        + 2 * D_pad * H_pad * 2                 # bf16 weights
                        + (2 * H_pad + 6 * D_pad) * 4),         # biases / LN
    )

    out2d = pl.pallas_call(
        functools.partial(_ffn_kernel, d_real=D),
        out_shape=jax.ShapeDtypeStruct((M_pad, D_pad), jnp.float32),
        grid_spec=pltpu.PrefetchScalarGridSpec(
            num_scalar_prefetch=0,
            grid=grid,
            in_specs=[row_spec, w1_spec, b1_spec, w2_spec,
                      vecD_spec, vecD_spec, vecD_spec],
            out_specs=pl.BlockSpec((TM, D_pad), lambda i: (i, 0)),
        ),
        compiler_params=pltpu.CompilerParams(
            dimension_semantics=("parallel",),       # shard M across TCs (v7x)
            vmem_limit_bytes=64 * 1024 * 1024,       # headroom; usage kept <32MiB
        ),
        cost_estimate=cost,
    )(x2d, w1, b1, w2, b2, gamma, beta)

    return out2d[:M, :D].reshape(B, S, D)


def init_params(key, dim_model, hidden):
    k1, k2, k3, k4 = jax.random.split(key, 4)
    # fc1: Linear(dim_model, hidden); fc2: Linear(hidden, dim_model)
    # Stored already-transposed as (in, out) so kernel does x @ W + b.
    w1 = (jax.random.uniform(k1, (dim_model, hidden), jnp.float32, -1.0, 1.0)
          / jnp.sqrt(dim_model))
    b1 = (jax.random.uniform(k2, (1, hidden), jnp.float32, -1.0, 1.0)
          / jnp.sqrt(dim_model))
    w2 = (jax.random.uniform(k3, (hidden, dim_model), jnp.float32, -1.0, 1.0)
          / jnp.sqrt(hidden))
    b2 = (jax.random.uniform(k4, (1, dim_model), jnp.float32, -1.0, 1.0)
          / jnp.sqrt(hidden))
    gamma = jnp.ones((1, dim_model), jnp.float32)   # LayerNorm weight init
    beta = jnp.zeros((1, dim_model), jnp.float32)   # LayerNorm bias init
    return dict(w1=w1, b1=b1, w2=w2, b2=b2, gamma=gamma, beta=beta)


if __name__ == "__main__":
    batch, seq, dim_model, hidden = 2, 8, 32, 64

    key = jax.random.PRNGKey(0)
    kx, kp = jax.random.split(key)
    x = jax.random.normal(kx, (batch, seq, dim_model), jnp.float32)
    params = init_params(kp, dim_model, hidden)

    out = position_wise_feed_forward(x, params)
    jax.block_until_ready(out)

    # Sanity check against a pure-JAX f32 reference. Tolerance is loosened
    # because the kernel uses bf16 MXU inputs (f32 accumulate) for the matmuls.
    def ref(x, p):
        h = jnp.maximum(x @ p["w1"] + p["b1"], 0.0)
        y = h @ p["w2"] + p["b2"]
        r = y + x
        mu = jnp.mean(r, -1, keepdims=True)
        var = jnp.mean((r - mu) ** 2, -1, keepdims=True)
        return (r - mu) / jnp.sqrt(var + LN_EPS) * p["gamma"] + p["beta"]

    assert out.shape == (batch, seq, dim_model)
    assert jnp.allclose(out, ref(x, params), atol=3e-2, rtol=3e-2)
    print("KERNEL_OK")
</pallas_src>

<mosaic_0001>
module attributes {stable_mosaic.version = 11 : i64} {
  func.func @_ffn_kernel(%arg0: i32, %arg1: memref<16x128xf32, #tpu.memory_space<vmem>>, %arg2: memref<128x128xbf16, #tpu.memory_space<vmem>>, %arg3: memref<1x128xf32, #tpu.memory_space<vmem>>, %arg4: memref<128x128xbf16, #tpu.memory_space<vmem>>, %arg5: memref<1x128xf32, #tpu.memory_space<vmem>>, %arg6: memref<1x128xf32, #tpu.memory_space<vmem>>, %arg7: memref<1x128xf32, #tpu.memory_space<vmem>>, %arg8: memref<16x128xf32, #tpu.memory_space<vmem>>) attributes {dimension_semantics = [#tpu.dimension_semantics<parallel>], iteration_bounds = array<i64: 1>, scalar_prefetch = 0 : i64, scratch_operands = 0 : i64, tpu.core_type = #tpu.core_type<tc>, window_params = [{transform_indices = @transform_0, window_bounds = array<i64: 16, 128>}, {pipeline_mode = #tpu.pipeline_mode<synchronous>, transform_indices = @transform_1, window_bounds = array<i64: 128, 128>}, {pipeline_mode = #tpu.pipeline_mode<synchronous>, transform_indices = @transform_2, window_bounds = array<i64: 1, 128>}, {pipeline_mode = #tpu.pipeline_mode<synchronous>, transform_indices = @transform_3, window_bounds = array<i64: 128, 128>}, {pipeline_mode = #tpu.pipeline_mode<synchronous>, transform_indices = @transform_4, window_bounds = array<i64: 1, 128>}, {pipeline_mode = #tpu.pipeline_mode<synchronous>, transform_indices = @transform_5, window_bounds = array<i64: 1, 128>}, {pipeline_mode = #tpu.pipeline_mode<synchronous>, transform_indices = @transform_6, window_bounds = array<i64: 1, 128>}, {transform_indices = @transform_7, window_bounds = array<i64: 16, 128>}]} {
    %c0 = arith.constant 0 : index
    %c0_0 = arith.constant 0 : index
    %0 = vector.load %arg1[%c0, %c0_0] : memref<16x128xf32, #tpu.memory_space<vmem>>, vector<16x128xf32>
    %1 = arith.truncf %0 : vector<16x128xf32> to vector<16x128xbf16>
    %c0_1 = arith.constant 0 : index
    %c0_2 = arith.constant 0 : index
    %2 = vector.load %arg2[%c0_1, %c0_2] : memref<128x128xbf16, #tpu.memory_space<vmem>>, vector<128x128xbf16>
    %cst = arith.constant dense<0.000000e+00> : vector<16x128xf32>
    %3 = tpu.matmul %1, %2, %cst {dimension_numbers = #tpu.dot_dimension_numbers<[1], [0], [0], [1], [0, 0, 1, 1], [], []>} : vector<16x128xbf16>, vector<128x128xbf16>, vector<16x128xf32> -> vector<16x128xf32>
    %c0_3 = arith.constant 0 : index
    %c0_4 = arith.constant 0 : index
    %4 = vector.load %arg3[%c0_3, %c0_4] : memref<1x128xf32, #tpu.memory_space<vmem>>, vector<1x128xf32>
    %5 = vector.broadcast %4 : vector<1x128xf32> to vector<16x128xf32>
    %6 = arith.addf %3, %5 : vector<16x128xf32>
    %cst_5 = arith.constant 0.000000e+00 : f32
    %7 = vector.broadcast %cst_5 : f32 to vector<16x128xf32>
    %8 = arith.maximumf %6, %7 : vector<16x128xf32>
    %9 = arith.truncf %8 : vector<16x128xf32> to vector<16x128xbf16>
    %c0_6 = arith.constant 0 : index
    %c0_7 = arith.constant 0 : index
    %10 = vector.load %arg4[%c0_6, %c0_7] : memref<128x128xbf16, #tpu.memory_space<vmem>>, vector<128x128xbf16>
    %cst_8 = arith.constant dense<0.000000e+00> : vector<16x128xf32>
    %11 = tpu.matmul %9, %10, %cst_8 {dimension_numbers = #tpu.dot_dimension_numbers<[1], [0], [0], [1], [0, 0, 1, 1], [], []>} : vector<16x128xbf16>, vector<128x128xbf16>, vector<16x128xf32> -> vector<16x128xf32>
    %c0_9 = arith.constant 0 : index
    %c0_10 = arith.constant 0 : index
    %12 = vector.load %arg5[%c0_9, %c0_10] : memref<1x128xf32, #tpu.memory_space<vmem>>, vector<1x128xf32>
    %13 = vector.broadcast %12 : vector<1x128xf32> to vector<16x128xf32>
    %14 = arith.addf %11, %13 : vector<16x128xf32>
    %15 = arith.addf %14, %0 : vector<16x128xf32>
    %cst_11 = arith.constant dense<0.000000e+00> : vector<16xf32>
    %16 = vector.multi_reduction <add>, %15, %cst_11 [1] : vector<16x128xf32> to vector<16xf32>
    %17 = vector.shape_cast %16 : vector<16xf32> to vector<16x1xf32>
    %cst_12 = arith.constant 3.125000e-02 : f32
    %18 = vector.broadcast %cst_12 : f32 to vector<16x1xf32>
    %19 = arith.mulf %17, %18 : vector<16x1xf32>
    %20 = vector.broadcast %19 : vector<16x1xf32> to vector<16x128xf32>
    %21 = arith.subf %15, %20 : vector<16x128xf32>
    %22 = tpu.iota {dimensions = array<i32: 1>} : vector<16x128xi32>
    %c32_i32 = arith.constant 32 : i32
    %23 = vector.broadcast %c32_i32 : i32 to vector<16x128xi32>
    %24 = arith.cmpi slt, %22, %23 : vector<16x128xi32>
    %cst_13 = arith.constant 0.000000e+00 : f32
    %25 = vector.broadcast %cst_13 : f32 to vector<16x128xf32>
    %26 = arith.select %24, %21, %25 : vector<16x128xi1>, vector<16x128xf32>
    %27 = arith.mulf %26, %26 : vector<16x128xf32>
    %cst_14 = arith.constant dense<0.000000e+00> : vector<16xf32>
    %28 = vector.multi_reduction <add>, %27, %cst_14 [1] : vector<16x128xf32> to vector<16xf32>
    %29 = vector.shape_cast %28 : vector<16xf32> to vector<16x1xf32>
    %cst_15 = arith.constant 3.125000e-02 : f32
    %30 = vector.broadcast %cst_15 : f32 to vector<16x1xf32>
    %31 = arith.mulf %29, %30 : vector<16x1xf32>
    %cst_16 = arith.constant 9.99999974E-6 : f32
    %32 = vector.broadcast %cst_16 : f32 to vector<16x1xf32>
    %33 = arith.addf %31, %32 : vector<16x1xf32>
    %34 = math.rsqrt %33 : vector<16x1xf32>
    %35 = vector.broadcast %34 : vector<16x1xf32> to vector<16x128xf32>
    %36 = arith.mulf %26, %35 : vector<16x128xf32>
    %c0_17 = arith.constant 0 : index
    %c0_18 = arith.constant 0 : index
    %37 = vector.load %arg6[%c0_17, %c0_18] : memref<1x128xf32, #tpu.memory_space<vmem>>, vector<1x128xf32>
    %38 = vector.broadcast %37 : vector<1x128xf32> to vector<16x128xf32>
    %39 = arith.mulf %36, %38 : vector<16x128xf32>
    %c0_19 = arith.constant 0 : index
    %c0_20 = arith.constant 0 : index
    %40 = vector.load %arg7[%c0_19, %c0_20] : memref<1x128xf32, #tpu.memory_space<vmem>>, vector<1x128xf32>
    %41 = vector.broadcast %40 : vector<1x128xf32> to vector<16x128xf32>
    %42 = arith.addf %39, %41 : vector<16x128xf32>
    %c0_21 = arith.constant 0 : index
    %c0_22 = arith.constant 0 : index
    %43 = vector.load %arg8[%c0_21, %c0_22] : memref<16x128xf32, #tpu.memory_space<vmem>>, vector<16x128xf32>
    tpu.vector_store %arg8[%c0_21, %c0_22], %42 {strides = array<i32>} : memref<16x128xf32, #tpu.memory_space<vmem>>, vector<16x128xf32>,
    return
  }
  func.func @transform_0(%arg0: i32) -> (i32, i32) {
    %c0_i32 = arith.constant 0 : i32
    %c0_i32_0 = arith.constant 0 : i32
    return %arg0, %c0_i32 : i32, i32
  }
  func.func @transform_1(%arg0: i32) -> (i32, i32) {
    %c0_i32 = arith.constant 0 : i32
    %c0_i32_0 = arith.constant 0 : i32
    %c0_i32_1 = arith.constant 0 : i32
    return %c0_i32, %c0_i32_0 : i32, i32
  }
  func.func @transform_2(%arg0: i32) -> (i32, i32) {
    %c0_i32 = arith.constant 0 : i32
    %c0_i32_0 = arith.constant 0 : i32
    %c0_i32_1 = arith.constant 0 : i32
    return %c0_i32, %c0_i32_0 : i32, i32
  }
  func.func @transform_3(%arg0: i32) -> (i32, i32) {
    %c0_i32 = arith.constant 0 : i32
    %c0_i32_0 = arith.constant 0 : i32
    %c0_i32_1 = arith.constant 0 : i32
    return %c0_i32, %c0_i32_0 : i32, i32
  }
  func.func @transform_4(%arg0: i32) -> (i32, i32) {
    %c0_i32 = arith.constant 0 : i32
    %c0_i32_0 = arith.constant 0 : i32
    %c0_i32_1 = arith.constant 0 : i32
    return %c0_i32, %c0_i32_0 : i32, i32
  }
  func.func @transform_5(%arg0: i32) -> (i32, i32) {
    %c0_i32 = arith.constant 0 : i32
    %c0_i32_0 = arith.constant 0 : i32
    %c0_i32_1 = arith.constant 0 : i32
    return %c0_i32, %c0_i32_0 : i32, i32
  }
  func.func @transform_6(%arg0: i32) -> (i32, i32) {
    %c0_i32 = arith.constant 0 : i32
    %c0_i32_0 = arith.constant 0 : i32
    %c0_i32_1 = arith.constant 0 : i32
    return %c0_i32, %c0_i32_0 : i32, i32
  }
  func.func @transform_7(%arg0: i32) -> (i32, i32) {
    %c0_i32 = arith.constant 0 : i32
    %c0_i32_0 = arith.constant 0 : i32
    return %arg0, %c0_i32 : i32, i32
  }
}

</mosaic_0001>

<bundles_post_ra>
// kernel: tpu_custom_call.1
= control target key start
LH: loop header
LB: loop body
LE: loop exit
PB: predicated region body
PF: predicated region fallthrough
CT: control target
= control target key end

     0   :  { %12 = vsyncpa [#allocation3], 0  ;;  %s868_s0 = inlined_call_operand.hbm [shape: f32[16,128], index: 0, kind: input, shape index: {}]   ;;  %s869_s1 = inlined_call_operand.hbm [shape: bf16[128,128], index: 1, kind: input, shape index: {}]   ;;  %s870_s2 = inlined_call_operand.hbm [shape: f32[1,128], index: 2, kind: input, shape index: {}]   ;;  %s871_s3 = inlined_call_operand.hbm [shape: bf16[128,128], index: 3, kind: input, shape index: {}]   ;;  %s872_s4 = inlined_call_operand.hbm [shape: f32[1,128], index: 4, kind: input, shape index: {}]   ;;  %s873_s5 = inlined_call_operand.hbm [shape: f32[1,128], index: 5, kind: input, shape index: {}]   ;;  %s874_s6 = inlined_call_operand.hbm [shape: f32[1,128], index: 6, kind: input, shape index: {}]   ;;  %s875_s7 = inlined_call_operand.hbm [shape: f32[16,128], index: 7, kind: output, shape index: {}]  }
   0x1   :  { %13 = vsyncpa [#allocation6], 0 }
   0x2   :  { %14 = vsyncpa [#allocation9], 0 }
   0x3   :  { %15 = vsyncpa [#allocation12], 0 }
   0x4   :  { %16 = vsyncpa [#allocation4], 0  ;;  %s712_s24 = smov [#allocation5]   ;;  %s526_s28 = scalar_lea.hbm %s869_s1, 1024 }
   0x5   :  { %s34_s25 = sshll.u32 %s712_s24, 4  ;;  %p527_p0 = scmp.ne.s32.totalorder %s869_s1, %s526_s28  ;;  %s35_s25 = int_to_ptr.vmem [resolvable:$true] %s34_s25 }
   0x6   :  { %p530_p1 = scmp.lt.u32.totalorder %s526_s28, %s869_s1 }
   0x8   :  { %p532_p2 = pnand %p530_p1, %p527_p0 }
   0xa   :  { %535 = shalt.err (!%p532_p2)
}
   0xb   :  { %s536_s10 = scalar_lea.vmem %s35_s25, 1024  ;;  %p541_p4 = scmp.lt.s32.totalorder %s35_s25, %s35_s25 }
   0xc   :  { %p537_p3 = scmp.ne.s32.totalorder %s35_s25, %s536_s10  ;;  %p542_p5 = scmp.lt.s32.totalorder %s536_s10, %s536_s10 }
   0xe   :  { %p543_p6 = por %p542_p5, %p541_p4 }
  0x10   :  { %p544_p7 = pnand %p543_p6, %p537_p3 }
  0x12   :  { %547 = shalt.err (!%p544_p7)
}
  0x13   :  { %s713_s11 = smov 64   ;;  %s714_s12 = smov 4  }
  0x14   :  { %40 = dma.hbm_to_vmem [thread:$0]  %s869_s1, 1024, %s35_s25, [#allocation6], %s713_s11, %s713_s11, %s714_s12  }
  0x15   :  { %s715_s15 = smov [#allocation8]   ;;  %s716_s17 = smov [#allocation11]  }
  0x16   :  { %s56_s16 = sshll.u32 %s715_s15, 4  ;;  %s79_s18 = sshll.u32 %s716_s17, 4  ;;  %s57_s16 = int_to_ptr.vmem [resolvable:$true] %s56_s16  ;;  %s80_s18 = int_to_ptr.vmem [resolvable:$true] %s79_s18 }
  0x17   :  { %s548_s21 = scalar_lea.hbm %s871_s3, 1024 }
  0x18   :  { %p549_p8 = scmp.ne.s32.totalorder %s871_s3, %s548_s21  ;;  %p552_p9 = scmp.lt.u32.totalorder %s548_s21, %s871_s3 }
  0x1a   :  { %p554_p10 = pnand %p552_p9, %p549_p8 }
  0x1c   :  { %557 = shalt.err (!%p554_p10)
}
  0x1d   :  { %s558_s1 = scalar_lea.vmem %s57_s16, 1024  ;;  %p563_p12 = scmp.lt.s32.totalorder %s57_s16, %s57_s16 }
  0x1e   :  { %p559_p11 = scmp.ne.s32.totalorder %s57_s16, %s558_s1  ;;  %p564_p13 = scmp.lt.s32.totalorder %s558_s1, %s558_s1 }
  0x20   :  { %p565_p0 = por %p564_p13, %p563_p12 }
  0x22   :  { %p566_p1 = pnand %p565_p0, %p559_p11 }
  0x24   :  { %569 = shalt.err (!%p566_p1)
}
  0x25   :  { %62 = dma.hbm_to_vmem [thread:$0]  %s871_s3, 1024, %s57_s16, [#allocation9], %s713_s11, %s713_s11, %s714_s12  }
  0x26   :  { %s570_s30 = scalar_lea.hbm %s873_s5, 16 }
  0x27   :  { %p571_p2 = scmp.ne.s32.totalorder %s873_s5, %s570_s30  ;;  %p574_p3 = scmp.lt.u32.totalorder %s570_s30, %s873_s5 }
  0x29   :  { %p576_p4 = pnand %p574_p3, %p571_p2 }
  0x2b   :  { %579 = shalt.err (!%p576_p4)
}
  0x2c   :  { %s580_s14 = scalar_lea.vmem %s80_s18, 16  ;;  %s584_s15 = scalar_lea.vmem %s80_s18, 32 }
  0x2d   :  { %p581_p5 = scmp.ne.s32.totalorder %s80_s18, %s580_s14  ;;  %p585_p6 = scmp.lt.s32.totalorder %s80_s18, %s80_s18 }
  0x2e   :  { %p586_p7 = scmp.lt.s32.totalorder %s584_s15, %s580_s14 }
  0x30   :  { %p587_p8 = por %p586_p7, %p585_p6 }
  0x32   :  { %p588_p9 = pnand %p587_p8, %p581_p5 }
  0x34   :  { %591 = shalt.err (!%p588_p9)
}
  0x35   :  { %82 = dma.hbm_to_vmem [thread:$0]  %s873_s5, 16, %s80_s18, [#allocation12]  }
  0x36   :  { %s717_s12 = smov [#allocation2]   ;;  %s592_s20 = scalar_lea.hbm %s868_s0, 256 }
  0x37   :  { %s22_s16 = sshll.u32 %s717_s12, 4  ;;  %p593_p10 = scmp.ne.s32.totalorder %s868_s0, %s592_s20  ;;  %s23_s16 = int_to_ptr.vmem [resolvable:$true] %s22_s16 }
  0x38   :  { %p596_p11 = scmp.lt.u32.totalorder %s592_s20, %s868_s0 }
  0x3a   :  { %p598_p12 = pnand %p596_p11, %p593_p10 }
  0x3c   :  { %601 = shalt.err (!%p598_p12)
}
  0x3d   :  { %s602_s26 = scalar_lea.vmem %s23_s16, 256  ;;  %p607_p0 = scmp.lt.s32.totalorder %s23_s16, %s23_s16 }
  0x3e   :  { %p603_p13 = scmp.ne.s32.totalorder %s23_s16, %s602_s26  ;;  %p608_p1 = scmp.lt.s32.totalorder %s602_s26, %s602_s26 }
  0x40   :  { %p609_p2 = por %p608_p1, %p607_p0 }
  0x42   :  { %p610_p3 = pnand %p609_p2, %p603_p13 }
  0x44   :  { %613 = shalt.err (!%p610_p3)
}
  0x45   :  { %s718_s5 = smov 128   ;;  %s719_s18 = smov 8  }
  0x46   :  { %28 = dma.hbm_to_vmem [thread:$0]  %s868_s0, 256, %s23_s16, [#allocation3], %s718_s5, %s718_s5, %s719_s18  }
  0x47   :  { %s720_s27 = smov [#allocation7]   ;;  %s721_s29 = smov [#allocation10]  }
  0x48   :  { %s47_s28 = sshll.u32 %s720_s27, 4  ;;  %s69_s30 = sshll.u32 %s721_s29, 4  ;;  %s48_s28 = int_to_ptr.vmem [resolvable:$true] %s47_s28  ;;  %s70_s30 = int_to_ptr.vmem [resolvable:$true] %s69_s30 }
  0x49   :  { %s614_s10 = scalar_lea.hbm %s870_s2, 16 }
  0x4a   :  { %p615_p4 = scmp.ne.s32.totalorder %s870_s2, %s614_s10  ;;  %p618_p5 = scmp.lt.u32.totalorder %s614_s10, %s870_s2 }
  0x4c   :  { %p620_p6 = pnand %p618_p5, %p615_p4 }
  0x4e   :  { %623 = shalt.err (!%p620_p6)
}
  0x4f   :  { %s624_s0 = scalar_lea.vmem %s48_s28, 16  ;;  %s628_s11 = scalar_lea.vmem %s48_s28, 32 }
  0x50   :  { %p625_p7 = scmp.ne.s32.totalorder %s48_s28, %s624_s0  ;;  %p629_p8 = scmp.lt.s32.totalorder %s48_s28, %s48_s28 }
  0x51   :  { %p630_p9 = scmp.lt.s32.totalorder %s628_s11, %s624_s0 }
  0x53   :  { %p631_p10 = por %p630_p9, %p629_p8 }
  0x55   :  { %p632_p11 = pnand %p631_p10, %p625_p7 }
  0x57   :  { %635 = shalt.err (!%p632_p11)
}
  0x58   :  { %50 = dma.hbm_to_vmem [thread:$0]  %s870_s2, 16, %s48_s28, [#allocation6]  }
  0x59   :  { %s636_s20 = scalar_lea.hbm %s872_s4, 16 }
  0x5a   :  { %p637_p12 = scmp.ne.s32.totalorder %s872_s4, %s636_s20  ;;  %p640_p13 = scmp.lt.u32.totalorder %s636_s20, %s872_s4 }
  0x5c   :  { %p642_p0 = pnand %p640_p13, %p637_p12 }
  0x5e   :  { %645 = shalt.err (!%p642_p0)
}
  0x5f   :  { %s646_s26 = scalar_lea.vmem %s70_s30, 16  ;;  %s650_s1 = scalar_lea.vmem %s70_s30, 32 }
  0x60   :  { %p647_p1 = scmp.ne.s32.totalorder %s70_s30, %s646_s26  ;;  %p651_p2 = scmp.lt.s32.totalorder %s70_s30, %s70_s30 }
  0x61   :  { %p652_p3 = scmp.lt.s32.totalorder %s650_s1, %s646_s26 }
  0x63   :  { %p653_p4 = por %p652_p3, %p651_p2 }
  0x65   :  { %p654_p5 = pnand %p653_p4, %p647_p1 }
  0x67   :  { %657 = shalt.err (!%p654_p5)
}
  0x68   :  { %72 = dma.hbm_to_vmem [thread:$0]  %s872_s4, 16, %s70_s30, [#allocation9]  }
  0x69   :  { %s722_s27 = smov [#allocation13]   ;;  %s658_s9 = scalar_lea.hbm %s874_s6, 16 }
  0x6a   :  { %s89_s28 = sshll.u32 %s722_s27, 4  ;;  %p659_p6 = scmp.ne.s32.totalorder %s874_s6, %s658_s9  ;;  %s90_s28 = int_to_ptr.vmem [resolvable:$true] %s89_s28 }
  0x6b   :  { %p662_p7 = scmp.lt.u32.totalorder %s658_s9, %s874_s6 }
  0x6d   :  { %p664_p8 = pnand %p662_p7, %p659_p6 }
  0x6f   :  { %667 = shalt.err (!%p664_p8)
}
  0x70   :  { %s668_s3 = scalar_lea.vmem %s90_s28, 16  ;;  %s672_s4 = scalar_lea.vmem %s90_s28, 32 }
  0x71   :  { %p669_p9 = scmp.ne.s32.totalorder %s90_s28, %s668_s3  ;;  %p673_p10 = scmp.lt.s32.totalorder %s90_s28, %s90_s28 }
  0x72   :  { %p674_p11 = scmp.lt.s32.totalorder %s672_s4, %s668_s3 }
  0x74   :  { %p675_p12 = por %p674_p11, %p673_p10 }
  0x76   :  { %p676_p13 = pnand %p675_p12, %p669_p9 }
  0x78   :  { %679 = shalt.err (!%p676_p13)
}
  0x79   :  { %92 = dma.hbm_to_vmem [thread:$0]  %s874_s6, 16, %s90_s28, [#allocation12]  }
  0x7a   :  { %702 = dma.done.wait [#allocation3], 256  }
  0x7b   :  { %703 = vsyncadd [#allocation3], 4294967040 }
  0x7c   :  { %704 = dma.done.wait [#allocation6], 1040  }
  0x7d   :  { %705 = vsyncadd [#allocation6], 4294966256 }
  0x7e   :  { %706 = dma.done.wait [#allocation9], 1040  }
  0x7f   :  { %707 = vsyncadd [#allocation9], 4294966256 }
  0x80   :  { %708 = dma.done.wait [#allocation12], 32  }
  0x81   :  { %709 = vsyncadd [#allocation12], 4294967264  ;;  %v723_v0 = vmov 0.0   ;;  %vm724_vm0 = vmmov 0   ;;  %v506_v1 = vld [vmem:[#allocation5] sm:$0xff]   ;;  %v507_v2 = vld [vmem:[#allocation5 + $0x8] sm:$0xff]   ;;  %v355_v39 = vlaneseq }
  0x82   :  { %452 = vmatprep.subr.bf16.mxu0 %v723_v0  ;;  %468 = vmatprep.mubr.msk.bf16.mxu0 %vm724_vm0, %v723_v0  ;;  %v508_v3 = vld [vmem:[#allocation5 + $0x10] sm:$0xff]   ;;  %v514_v4 = vld [vmem:[#allocation8] sm:$0xff]   ;;  %v509_v5 = vld [vmem:[#allocation5 + $0x18] sm:$0xff]   ;;  %s725_s6 = smov [#allocation14]  }
  0x83   :  { %472 = vmatprep.subr.bf16.mxu1 %v723_v0  ;;  %488 = vmatprep.mubr.msk.bf16.mxu1 %vm724_vm0, %v723_v0  ;;  %v515_v6 = vld [vmem:[#allocation8 + $0x8] sm:$0xff]   ;;  %v510_v7 = vld [vmem:[#allocation5 + $0x20] sm:$0xff]   ;;  %v516_v8 = vld [vmem:[#allocation8 + $0x10] sm:$0xff]   ;;  %v356_v40 = vand.u32 127, %v355_v39  ;;  %s399_s11 = sshll.u32 %s725_s6, 4  ;;  %s400_s11 = int_to_ptr.vmem [resolvable:$true] %s399_s11 }
  0x84   :  { %453 = vmatpush3.bf16.msra.mxu0 %v506_v1  ;;  %473 = vmatpush3.bf16.msra.mxu1 %v514_v4  ;;  %v511_v9 = vld [vmem:[#allocation5 + $0x28] sm:$0xff]   ;;  %v517_v10 = vld [vmem:[#allocation8 + $0x18] sm:$0xff]   ;;  %v512_v11 = vld [vmem:[#allocation5 + $0x30] sm:$0xff]   ;;  %s680_s12 = scalar_lea.vmem %s400_s11, 256  ;;  %p685_p1 = scmp.lt.s32.totalorder %s400_s11, %s400_s11 }
  0x85   :  { %454 = vmatprep.subr.bf16.mxu0 %v723_v0  ;;  %474 = vmatprep.subr.bf16.mxu1 %v723_v0  ;;  %v518_v12 = vld [vmem:[#allocation8 + $0x20] sm:$0xff]   ;;  %v513_v13 = vld [vmem:[#allocation5 + $0x38] sm:$0xff]   ;;  %v115_v14 = vld [vmem:[#allocation2] sm:$0xff]  ;;  %vm357_vm1 = vcmp.lt.s32.totalorder %v356_v40, 32  ;;  %p681_p0 = scmp.ne.s32.totalorder %s400_s11, %s680_s12  ;;  %p686_p2 = scmp.lt.s32.totalorder %s680_s12, %s680_s12 }
  0x86   :  { %v116_v15 = vld [vmem:[#allocation2 + $0x8] sm:$0xff]  ;;  %v519_v16 = vld [vmem:[#allocation8 + $0x28] sm:$0xff]   ;;  %v414_v20 = vld [vmem:[#allocation7] ss:$0 sm:$0xff] }
  0x87   :  { %v117_v17 = vpack.c.bf16 %v116_v15, %v115_v14  ;;  %v520_v18 = vld [vmem:[#allocation8 + $0x30] sm:$0xff]   ;;  %v521_v19 = vld [vmem:[#allocation8 + $0x38] sm:$0xff]   ;;  %v423_v30 = vld [vmem:[#allocation10] ss:$0 sm:$0xff]  ;;  %p687_p3 = por %p686_p2, %p685_p1 }
  0x88   :  { %455 = vmatpush3.bf16.msra.mxu0 %v507_v2  ;;  %475 = vmatpush3.bf16.msra.mxu1 %v515_v6  ;;  %v432_v58 = vld [vmem:[#allocation11] ss:$0 sm:$0xff]  ;;  %v433_v60 = vld [vmem:[#allocation13] ss:$0 sm:$0xff] }
  0x89   :  { %456 = vmatprep.subr.bf16.mxu0 %v723_v0  ;;  %476 = vmatprep.subr.bf16.mxu1 %v723_v0  ;;  %p688_p4 = pnand %p687_p3, %p681_p0 }
  0x8c   :  { %457 = vmatpush3.bf16.msra.mxu0 %v508_v3  ;;  %477 = vmatpush3.bf16.msra.mxu1 %v516_v8 }
  0x8d   :  { %458 = vmatprep.subr.bf16.mxu0 %v723_v0  ;;  %478 = vmatprep.subr.bf16.mxu1 %v723_v0 }
  0x90   :  { %459 = vmatpush3.bf16.msra.mxu0 %v509_v5  ;;  %479 = vmatpush3.bf16.msra.mxu1 %v517_v10 }
  0x91   :  { %460 = vmatprep.subr.bf16.mxu0 %v723_v0  ;;  %480 = vmatprep.subr.bf16.mxu1 %v723_v0 }
  0x94   :  { %461 = vmatpush3.bf16.msra.mxu0 %v510_v7  ;;  %481 = vmatpush3.bf16.msra.mxu1 %v518_v12 }
  0x95   :  { %462 = vmatprep.subr.bf16.mxu0 %v723_v0  ;;  %482 = vmatprep.subr.bf16.mxu1 %v723_v0 }
  0x98   :  { %463 = vmatpush3.bf16.msra.mxu0 %v511_v9  ;;  %483 = vmatpush3.bf16.msra.mxu1 %v519_v16 }
  0x99   :  { %464 = vmatprep.subr.bf16.mxu0 %v723_v0  ;;  %484 = vmatprep.subr.bf16.mxu1 %v723_v0 }
  0x9c   :  { %465 = vmatpush3.bf16.msra.mxu0 %v512_v11  ;;  %485 = vmatpush3.bf16.msra.mxu1 %v520_v18 }
  0x9d   :  { %466 = vmatprep.subr.bf16.mxu0 %v723_v0  ;;  %486 = vmatprep.subr.bf16.mxu1 %v723_v0 }
  0xa0   :  { %467 = vmatpush3.bf16.msra.mxu0 %v513_v13  ;;  %487 = vmatpush3.bf16.msra.mxu1 %v521_v19 }
  0xa3   :  { %469 = vmatmul.mubr.bf16.vlgmr.msra.gmra.mrb[0].mxu0 %v117_v17 }
 0x176   :  { %v223_v21 = vpop.f32.mrb[0].mxu0 }
 0x177   :  { %v224_v22 = vadd.f32 %v414_v20, %v223_v21  ;;  %v470_v23 = vpop.f32.mrb[1].mxu0 }
 0x178   :  { %v226_v24 = vpop.f32.mrb[2].mxu0 }
 0x179   :  { %v227_v25 = vadd.f32 %v414_v20, %v226_v24  ;;  %v471_v26 = vpop.f32.mrb[3].mxu0  ;;  %v230_v27 = vmax.f32 %v224_v22, 0.0 }
 0x17b   :  { %v231_v28 = vmax.f32 %v227_v25, 0.0 }
 0x17d   :  { %v232_v29 = vpack.c.bf16 %v231_v28, %v230_v27 }
 0x17f   :  { %489 = vmatmul.mubr.bf16.vlgmr.msra.gmra.mrb[0].mxu1 %v232_v29 }
 0x252   :  { %v338_v31 = vpop.f32.mrb[0].mxu1 }
 0x253   :  { %v339_v32 = vadd.f32 %v423_v30, %v338_v31  ;;  %v490_v33 = vpop.f32.mrb[1].mxu1 }
 0x254   :  { %v341_v34 = vpop.f32.mrb[2].mxu1 }
 0x255   :  { %v342_v35 = vadd.f32 %v423_v30, %v341_v34  ;;  %v491_v36 = vpop.f32.mrb[3].mxu1  ;;  %v345_v37 = vadd.f32 %v339_v32, %v115_v14 }
 0x257   :  { %347 = vadd.xlane.f32.xlu0 %v345_v37  ;;  %v346_v38 = vadd.f32 %v342_v35, %v116_v15 }
 0x25b   :  { %349 = vadd.xlane.f32.xlu0 %v346_v38 }
 0x2e4   :  { %v348_v41 = vpop.xlane.xlu0 %347 }
 0x2e5   :  { %v351_v42 = vmul.f32 0.03125, %v348_v41 }
 0x2e7   :  { %v353_v43 = vsub.f32 %v345_v37, %v351_v42 }
 0x2e8   :  { %v350_v44 = vpop.xlane.xlu0 %349 }
 0x2e9   :  { %v352_v45 = vmul.f32 0.03125, %v350_v44  ;;  %v358_v46 = vsel %vm357_vm1, %v353_v43, 0.0 }
 0x2ea   :  { %v360_v47 = vmul.f32 %v358_v46, %v358_v46 }
 0x2eb   :  { %v354_v48 = vsub.f32 %v346_v38, %v352_v45 }
 0x2ec   :  { %362 = vadd.xlane.f32.xlu1 %v360_v47 }
 0x2ed   :  { %v359_v49 = vsel %vm357_vm1, %v354_v48, 0.0 }
 0x2ee   :  { %v361_v50 = vmul.f32 %v359_v49, %v359_v49 }
 0x2f0   :  { %364 = vadd.xlane.f32.xlu1 %v361_v50 }
 0x379   :  { %v363_v51 = vpop.xlane.xlu1 %362 }
 0x37a   :  { %v366_v52 = vmul.f32 0.03125, %v363_v51 }
 0x37c   :  { %v368_v53 = vadd.f32 1e-05, %v366_v52 }
 0x37d   :  { %v365_v54 = vpop.xlane.xlu1 %364 }
 0x37e   :  { %522 = vrsqrt.f32 %v368_v53  ;;  %v367_v55 = vmul.f32 0.03125, %v365_v54 }
 0x380   :  { %v369_v56 = vadd.f32 1e-05, %v367_v55 }
 0x382   :  { %524 = vrsqrt.f32 %v369_v56 }
 0x388   :  { %v523_v57 = vpop.eup %522 }
 0x389   :  { %v372_v59 = vmul.f32 %v523_v57, %v358_v46 }
 0x38b   :  { %v381_v61 = vmul.f32 %v432_v58, %v372_v59 }
 0x38c   :  { %v525_v62 = vpop.eup %524 }
 0x38d   :  { %v373_v63 = vmul.f32 %v525_v62, %v359_v49  ;;  %v390_v0 = vadd.f32 %v433_v60, %v381_v61 }
 0x38f   :  { %v382_v1 = vmul.f32 %v432_v58, %v373_v63  ;;  %392 = vst [vmem:[#allocation14] sm:$0xff] %v390_v0 }
 0x391   :  { %v391_v2 = vadd.f32 %v433_v60, %v382_v1 }
 0x393   :  { %393 = vst [vmem:[#allocation14 + $0x8] sm:$0xff] %v391_v2 }
 0x394   :  { %691 = shalt.err (!%p688_p4)
}
 0x395   :  { %s692_s19 = scalar_lea.hbm %s875_s7, 256 }
 0x396   :  { %p693_p5 = scmp.ne.s32.totalorder %s875_s7, %s692_s19  ;;  %p696_p6 = scmp.lt.u32.totalorder %s692_s19, %s875_s7 }
 0x398   :  { %p698_p7 = pnand %p696_p6, %p693_p5 }
 0x39a   :  { %701 = shalt.err (!%p698_p7)
}
 0x39b   :  { %405 = dma.vmem_to_hbm [thread:$0]  %s400_s11, 256, %s875_s7, [#allocation4], %s718_s5, %s718_s5, %s719_s18  }
 0x39c   :  { %710 = dma.done.wait [#allocation4], 256  }
 0x39d   :  { %711 = vsyncadd [#allocation4], 4294967040 }
 0x39e   :  { %409 = vsyncpa [#allocation3], 1 }
 0x39f   :  { %410 = vsyncpa [#allocation6], 1 }
 0x3a0   :  { %411 = vsyncpa [#allocation9], 1 }
 0x3a1   :  { %412 = vsyncpa [#allocation12], 1 }
 0x3a2   :  { %413 = vsyncpa [#allocation4], 1 }

</bundles_post_ra>
